<compile_context>
chip_gen: v6e
topology: v6e:2x2x1
jax: 0.10.0
libtpu: 0.0.40
codegen_flags: <defaults>
</compile_context>

<pallas_src>
import math
import jax
import jax.numpy as jnp
from jax.experimental import pallas as pl
from jax.experimental.pallas import tpu as pltpu


_LANE = 128                      # lane width: pad feature dims to multiples of this
_MAX_TILE_N = 256                # row tile for the adj matmul
_VMEM_CAP_BYTES = 64 * 1024 * 1024   # v7x physical VMEM per TC (smallest generation)


def _round_up(x, m):
    return ((x + m - 1) // m) * m


def _pick_tile(dim, candidates):
    for c in candidates:
        if c <= dim and dim % c == 0:
            return c
    return dim


def _vmem_limit(est_bytes):
    # Generous 2x margin, clamped so we never ask for more than v7x can give.
    return int(min(_VMEM_CAP_BYTES, max(2 * est_bytes, 16 * 1024 * 1024)))


# ---------------------------------------------------------------------------
# Kernels
# ---------------------------------------------------------------------------

def _dense_kernel(a_ref, w_ref, o_ref, acc_ref):
    """(TILE_M, TILE_K) @ (TILE_K, F) with K-reduction accumulator."""
    @pl.when(pl.program_id(1) == 0)
    def _init():
        acc_ref[...] = jnp.zeros_like(acc_ref)

    acc_ref[...] += jnp.dot(a_ref[...], w_ref[...],
                            preferred_element_type=jnp.float32)

    @pl.when(pl.program_id(1) == pl.num_programs(1) - 1)
    def _fin():
        o_ref[...] = acc_ref[...].astype(o_ref.dtype)


def _dense_bias_kernel(a_ref, w_ref, b_ref, o_ref, acc_ref):
    @pl.when(pl.program_id(1) == 0)
    def _init():
        acc_ref[...] = jnp.zeros_like(acc_ref)

    acc_ref[...] += jnp.dot(a_ref[...], w_ref[...],
                            preferred_element_type=jnp.float32)

    @pl.when(pl.program_id(1) == pl.num_programs(1) - 1)
    def _fin():
        o_ref[...] = (acc_ref[...]
                      + b_ref[...].astype(jnp.float32)).astype(o_ref.dtype)


def _adj_kernel(adj_ref, h_ref, o_ref):
    """out[b, rt] = adj[b, rt rows, :] @ h[b]  (row-tiled, h resident per batch)."""
    out = jnp.dot(adj_ref[0], h_ref[0], preferred_element_type=jnp.float32)
    o_ref[0] = out.astype(o_ref.dtype)


def _adj_bias_kernel(adj_ref, h_ref, b_ref, o_ref):
    out = jnp.dot(adj_ref[0], h_ref[0], preferred_element_type=jnp.float32)
    out = out + b_ref[...].astype(jnp.float32)      # (1, F) broadcasts over rows
    o_ref[0] = out.astype(o_ref.dtype)


# ---------------------------------------------------------------------------
# pallas_call wrappers
# ---------------------------------------------------------------------------

def _dense_matmul(a, w, bias, out_dtype):
    """a: (M, K), w: (K, F), bias: (1, F) or None -> (M, F)."""
    M, K = a.shape
    F = w.shape[1]
    tm = _pick_tile(M, (512, 256, 128, 64, 32, 16, 8))
    tk = _pick_tile(K, (512, 384, 256, 128))
    grid = (M // tm, K // tk)

    in_itemsize = jnp.dtype(a.dtype).itemsize
    out_itemsize = jnp.dtype(out_dtype).itemsize

    in_specs = [
        pl.BlockSpec((tm, tk), lambda i, k: (i, k)),
        pl.BlockSpec((tk, F), lambda i, k: (k, 0)),
    ]
    args = [a, w]
    if bias is not None:
        in_specs.append(pl.BlockSpec((1, F), lambda i, k: (0, 0)))
        args.append(bias)
        kernel = _dense_bias_kernel
    else:
        kernel = _dense_kernel

    vmem_est = (2 * (tm * tk + tk * F) * in_itemsize
                + 2 * tm * F * out_itemsize
                + tm * F * 4
                + (2 * F * in_itemsize if bias is not None else 0))
    bytes_accessed = ((M * K + K * F) * in_itemsize
                      + M * F * out_itemsize
                      + (F * in_itemsize if bias is not None else 0))

    return pl.pallas_call(
        kernel,
        out_shape=jax.ShapeDtypeStruct((M, F), out_dtype),
        grid_spec=pltpu.PrefetchScalarGridSpec(
            num_scalar_prefetch=0,
            grid=grid,
            in_specs=in_specs,
            out_specs=pl.BlockSpec((tm, F), lambda i, k: (i, 0)),
            scratch_shapes=[pltpu.VMEM((tm, F), jnp.float32)],
        ),
        compiler_params=pltpu.CompilerParams(
            dimension_semantics=("parallel", "arbitrary"),
            vmem_limit_bytes=_vmem_limit(vmem_est),
        ),
        cost_estimate=pl.CostEstimate(
            flops=2 * M * K * F,
            transcendentals=0,
            bytes_accessed=int(bytes_accessed),
        ),
    )(*args)


def _adj_matmul(adj, h, bias, tile_n, out_dtype):
    """adj: (B, N_p, N_p), h: (B, N_p, F), bias: (1, F) or None -> (B, N_p, F)."""
    B, N_p, _ = adj.shape
    F = h.shape[2]
    grid = (B, N_p // tile_n)

    in_itemsize = jnp.dtype(adj.dtype).itemsize
    out_itemsize = jnp.dtype(out_dtype).itemsize

    in_specs = [
        pl.BlockSpec((1, tile_n, N_p), lambda b, r: (b, r, 0)),
        pl.BlockSpec((1, N_p, F), lambda b, r: (b, 0, 0)),   # resident per batch
    ]
    args = [adj, h]
    if bias is not None:
        in_specs.append(pl.BlockSpec((1, F), lambda b, r: (0, 0)))
        args.append(bias)
        kernel = _adj_bias_kernel
    else:
        kernel = _adj_kernel

    vmem_est = (2 * (tile_n * N_p + N_p * F) * in_itemsize
                + 2 * tile_n * F * out_itemsize
                + (2 * F * in_itemsize if bias is not None else 0))
    bytes_accessed = ((B * N_p * N_p + B * N_p * F) * in_itemsize
                      + B * N_p * F * out_itemsize
                      + (F * in_itemsize if bias is not None else 0))

    return pl.pallas_call(
        kernel,
        out_shape=jax.ShapeDtypeStruct((B, N_p, F), out_dtype),
        grid_spec=pltpu.PrefetchScalarGridSpec(
            num_scalar_prefetch=0,
            grid=grid,
            in_specs=in_specs,
            out_specs=pl.BlockSpec((1, tile_n, F), lambda b, r: (b, r, 0)),
        ),
        compiler_params=pltpu.CompilerParams(
            dimension_semantics=("parallel", "parallel"),
            vmem_limit_bytes=_vmem_limit(vmem_est),
        ),
        cost_estimate=pl.CostEstimate(
            flops=2 * B * N_p * N_p * F,
            transcendentals=0,
            bytes_accessed=int(bytes_accessed),
        ),
    )(*args)


# ---------------------------------------------------------------------------
# Public forward
# ---------------------------------------------------------------------------

def graph_convolution(x, adj, weight, bias=None):
    """x: (B, N, Fin), adj: (B, N, N), weight: (Fin, Fout), bias: (1,1,Fout) or None."""
    B, N, Fin = x.shape
    Fout = weight.shape[1]
    dtype = x.dtype

    # Lane-dense feature dims.
    Fin_p = _round_up(Fin, _LANE)
    Fout_p = _round_up(Fout, _LANE)

    # Row tiling of the node axis.
    N8 = _round_up(N, 8)
    if N8 <= _MAX_TILE_N:
        tile_n, N_p = N8, N8
    else:
        tile_n = _MAX_TILE_N
        N_p = _round_up(N, tile_n)

    # Zero padding is exact: padded adj rows/cols and padded feature rows/cols
    # of W contribute nothing; padded outputs are sliced off at the end.
    x_p = jnp.pad(x, ((0, 0), (0, N_p - N), (0, Fin_p - Fin)))
    adj_p = jnp.pad(adj, ((0, 0), (0, N_p - N), (0, N_p - N)))
    w_p = jnp.pad(weight, ((0, Fin_p - Fin), (0, Fout_p - Fout))).astype(dtype)
    b_p = None
    if bias is not None:
        b_p = jnp.pad(bias.reshape(1, Fout),
                      ((0, 0), (0, Fout_p - Fout))).astype(dtype)

    if Fin >= Fout:
        # Project first: support = x @ W (one big matmul), out = adj @ support + bias.
        support = _dense_matmul(x_p.reshape(B * N_p, Fin_p), w_p, None, dtype)
        support = support.reshape(B, N_p, Fout_p)
        out_p = _adj_matmul(adj_p, support, b_p, tile_n, dtype)
    else:
        # Aggregate first: agg = adj @ x, out = agg @ W + bias (fewer FLOPs when Fin < Fout).
        agg = _adj_matmul(adj_p, x_p, None, tile_n, dtype)
        out_p = _dense_matmul(agg.reshape(B * N_p, Fin_p), w_p, b_p, dtype)
        out_p = out_p.reshape(B, N_p, Fout_p)

    return out_p[:, :N, :Fout]


def init_graph_convolution_params(key, in_features, out_features, use_bias=False,
                                  dtype=jnp.float32):
    """Mirrors GraphConvolution.reset_parameters: uniform(-stdv, stdv)."""
    stdv = 1.0 / math.sqrt(out_features)
    k_w, k_b = jax.random.split(key)
    weight = jax.random.uniform(k_w, (in_features, out_features),
                                minval=-stdv, maxval=stdv, dtype=dtype)
    bias = None
    if use_bias:
        bias = jax.random.uniform(k_b, (1, 1, out_features),
                                  minval=-stdv, maxval=stdv, dtype=dtype)
    return weight, bias


if __name__ == "__main__":
    key = jax.random.PRNGKey(0)
    k_x, k_adj, k_p1, k_p2 = jax.random.split(key, 4)

    B, N = 2, 16

    x_base = jax.random.normal(k_x, (B, N, 64), dtype=jnp.float32)
    a = jax.random.uniform(k_adj, (B, N, N), dtype=jnp.float32)
    a = (a + jnp.swapaxes(a, -1, -2)) * 0.5
    adj = a / jnp.sum(a, axis=-1, keepdims=True)

    # Case 1: Fin < Fout (aggregate-first path), with bias.
    Fin1, Fout1 = 8, 32
    x1 = x_base[:, :, :Fin1]
    w1, b1 = init_graph_convolution_params(k_p1, Fin1, Fout1, use_bias=True)
    out1 = jax.block_until_ready(graph_convolution(x1, adj, w1, b1))
    ref1 = jnp.matmul(adj, jnp.matmul(x1, w1)) + b1
    assert out1.shape == (B, N, Fout1)
    assert jnp.allclose(out1, ref1, atol=2e-5, rtol=1e-4)

    # Case 2: Fin >= Fout (project-first path), no bias.
    Fin2, Fout2 = 64, 16
    x2 = x_base[:, :, :Fin2]
    w2, _ = init_graph_convolution_params(k_p2, Fin2, Fout2, use_bias=False)
    out2 = jax.block_until_ready(graph_convolution(x2, adj, w2, None))
    ref2 = jnp.matmul(adj, jnp.matmul(x2, w2))
    assert out2.shape == (B, N, Fout2)
    assert jnp.allclose(out2, ref2, atol=2e-5, rtol=1e-4)

    print("KERNEL_OK")
</pallas_src>

<mosaic_0001>
module attributes {stable_mosaic.version = 11 : i64} {
  func.func @_adj_kernel(%arg0: i32, %arg1: i32, %arg2: memref<1x16x16xf32, #tpu.memory_space<vmem>>, %arg3: memref<1x16x128xf32, #tpu.memory_space<vmem>>, %arg4: memref<1x16x128xf32, #tpu.memory_space<vmem>>) attributes {dimension_semantics = [#tpu.dimension_semantics<parallel>, #tpu.dimension_semantics<parallel>], iteration_bounds = array<i64: 2, 1>, scalar_prefetch = 0 : i64, scratch_operands = 0 : i64, tpu.core_type = #tpu.core_type<tc>, window_params = [{transform_indices = @transform_0, window_bounds = array<i64: 1, 16, 16>}, {transform_indices = @transform_1, window_bounds = array<i64: 1, 16, 128>}, {transform_indices = @transform_2, window_bounds = array<i64: 1, 16, 128>}]} {
    %c0 = arith.constant 0 : index
    %c0_0 = arith.constant 0 : index
    %c0_1 = arith.constant 0 : index
    %0 = vector.load %arg2[%c0, %c0_0, %c0_1] : memref<1x16x16xf32, #tpu.memory_space<vmem>>, vector<1x16x16xf32>
    %1 = vector.shape_cast %0 : vector<1x16x16xf32> to vector<16x16xf32>
    %c0_2 = arith.constant 0 : index
    %c0_3 = arith.constant 0 : index
    %c0_4 = arith.constant 0 : index
    %2 = vector.load %arg3[%c0_2, %c0_3, %c0_4] : memref<1x16x128xf32, #tpu.memory_space<vmem>>, vector<1x16x128xf32>
    %3 = vector.shape_cast %2 : vector<1x16x128xf32> to vector<16x128xf32>
    %cst = arith.constant dense<0.000000e+00> : vector<16x128xf32>
    %4 = tpu.matmul %1, %3, %cst {dimension_numbers = #tpu.dot_dimension_numbers<[1], [0], [0], [1], [0, 0, 1, 1], [], []>} : vector<16x16xf32>, vector<16x128xf32>, vector<16x128xf32> -> vector<16x128xf32>
    %c0_5 = arith.constant 0 : index
    %c0_6 = arith.constant 0 : index
    %c0_7 = arith.constant 0 : index
    %5 = vector.load %arg4[%c0_5, %c0_6, %c0_7] : memref<1x16x128xf32, #tpu.memory_space<vmem>>, vector<1x16x128xf32>
    %6 = vector.shape_cast %5 : vector<1x16x128xf32> to vector<16x128xf32>
    %7 = vector.shape_cast %4 : vector<16x128xf32> to vector<1x16x128xf32>
    tpu.vector_store %arg4[%c0_5, %c0_6, %c0_7], %7 {strides = array<i32>} : memref<1x16x128xf32, #tpu.memory_space<vmem>>, vector<1x16x128xf32>,
    return
  }
  func.func @transform_0(%arg0: i32, %arg1: i32) -> (i32, i32, i32) {
    %c0_i32 = arith.constant 0 : i32
    %c0_i32_0 = arith.constant 0 : i32
    return %arg0, %arg1, %c0_i32 : i32, i32, i32
  }
  func.func @transform_1(%arg0: i32, %arg1: i32) -> (i32, i32, i32) {
    %c0_i32 = arith.constant 0 : i32
    %c0_i32_0 = arith.constant 0 : i32
    %c0_i32_1 = arith.constant 0 : i32
    return %arg0, %c0_i32, %c0_i32_0 : i32, i32, i32
  }
  func.func @transform_2(%arg0: i32, %arg1: i32) -> (i32, i32, i32) {
    %c0_i32 = arith.constant 0 : i32
    %c0_i32_0 = arith.constant 0 : i32
    return %arg0, %arg1, %c0_i32 : i32, i32, i32
  }
}

</mosaic_0001>

<bundles_post_ra>
// kernel: tpu_custom_call.1
= control target key start
LH: loop header
LB: loop body
LE: loop exit
PB: predicated region body
PF: predicated region fallthrough
CT: control target
= control target key end

     0   :  { %7 = vsyncpa [#allocation3], 0  ;;  %s887_s0 = inlined_call_operand.hbm [shape: f32[2,16,16], index: 0, kind: input, shape index: {}]   ;;  %s888_s1 = inlined_call_operand.hbm [shape: f32[2,16,128], index: 1, kind: input, shape index: {}]   ;;  %s889_s2 = inlined_call_operand.hbm [shape: f32[2,16,128], index: 2, kind: output, shape index: {}]  }
   0x1   :  { %9 = vsyncpa [#allocation3 + $0x1], 0 }
   0x2   :  { %10 = vsyncpa [#allocation6], 0 }
   0x3   :  { %12 = vsyncpa [#allocation6 + $0x1], 0 }
   0x4   :  { %13 = vsyncpa [#allocation4], 0 }
   0x5   :  { %15 = vsyncpa [#allocation4 + $0x1], 0  ;;  %s706_s9 = smov 0   ;;  %s708_s10 = smov 0  }
   0x6   :  { %s710_s11 = smov 0   ;;  %s712_s12 = smov 0  }
   0x7   :  { %s714_s13 = smov 0   ;;  %s716_s14 = smov 0  }
   0x8 LB: > { %s436_s15 = sadd.s32 4294967295, %s682_s14   ;;  %s437_s16 = sadd.s32 4294967294, %s682_s14   ;;  %s682_s14 = sphi %s716_s14, %s21_s14   ;;  %s678_s13 = sphi %s714_s13, %s900_s13   ;;  %s674_s12 = sphi %s712_s12, %s899_s12   ;;  %s670_s11 = sphi %s710_s11, %s898_s11   ;;  %s666_s10 = sphi %s708_s10, %s897_s10   ;;  %s662_s9 = sphi %s706_s9, %s896_s9  }
   0x9   : > { %s33_s17 = sadd.s32 1, %s678_s13  ;;  %s42_s18 = sadd.s32 1, %s670_s11 }
   0xa   : > { %p35_p0 = scmp.ge.s32.totalorder %s33_s17, 2  ;;  %p49_p1 = scmp.ne.s32.totalorder %s670_s11, %s666_s10 }
   0xb   : > { %p50_p2 = scmp.eq.s32.totalorder %s682_s14, 0  ;;  %p55_p3 = scmp.ne.s32.totalorder %s666_s10, %s662_s9 }
   0xc   : > { %s902_s17 = smov (%p35_p0, %s33_s17), 0  ;;  %p56_p5 = scmp.eq.s32.totalorder %s436_s15, 0 }
   0xd   : > { %p747_p4 = por %p50_p2, %p49_p1  ;;  %s37_s20 = ssub.s32 %s678_s13, %s902_s17 }
   0xe   : > { %p107_p6 = scmp.eq.s32.totalorder %s436_s15, 1  ;;  %p40_p7 = scmp.eq.s32.totalorder %s37_s20, 0 }
   0xf   : > { %p753_p8 = por %p56_p5, %p55_p3  ;;  %p113_p10 = scmp.eq.s32.totalorder %s437_s16, 1 }
  0x10   : > { %p757_p9 = por %p107_p6, %p49_p1  ;;  %p439_p12 = scmp.ge.s32.totalorder %s682_s14, 2 }
  0x11   : > { %s762_s23 = scalar_select %p40_p7, %s670_s11, %s42_s18  }
  0x12   : > { %p764_p11 = por %p113_p10, %p55_p3  ;;  %p488_p13 = scmp.lt.s32.totalorder %s682_s14, 2 }
  0x13   : > { %s771_s25 = sand.u32 1, %s670_s11   ;;  %s457_s27 = sshll.u32 %s678_s13, 8 }
  0x14   : > { %s440_s26 = sshll.u32 %s771_s25, 4  ;;  %s145_s30 = scalar_lea.hbm %s887_s0, %s457_s27 }
  0x15   : > { %s137_s3 = scalar_lea.vmem [#allocation2], %s440_s26  ;;  %p784_p0 = pnand %p488_p13, %p747_p4 }
  0x16   : > { %s146_s4 = sshll.u32 %s137_s3, 4  ;;  %p446_p1 = scmp.ge.s32.totalorder %s682_s14, 1  ;;  %s147_s4 = int_to_ptr.vmem [resolvable:$true] %s146_s4 }
  0x17   : > { %s134_s6 = scalar_lea.sflag [#allocation3], %s771_s25  ;;  %p544_p2 = pneg %p784_p0 }
  0x18   : > { %s555_s7 = scalar_lea.vmem %s147_s4, 256  ;;  %s684_s8 = smov [#allocation2]  }
  0x19   : > { %p556_p3 = scmp.ne.s32.totalorder %s147_s4, %s555_s7  ;;  %s560_s15 = sshll.u32 %s684_s8, 4  ;;  %s561_s15 = int_to_ptr.vmem [resolvable:$false] %s560_s15 }
  0x1a   : > { %s562_s16 = scalar_lea.vmem %s561_s15, 512  ;;  %p563_p4 = scmp.lt.s32.totalorder %s147_s4, %s561_s15 }
  0x1b   : > { %p558_p5 = pnand %p556_p3, %p544_p2  ;;  %p564_p7 = scmp.lt.s32.totalorder %s562_s16, %s555_s7 }
  0x1d   : > { %p559_p6 = pneg %p558_p5  ;;  %p565_p10 = por %p564_p7, %p563_p4 }
  0x1f   : > { %p566_p13 = pnand %p565_p10, %p559_p6 }
  0x21   : > { %569 = shalt.err (!%p566_p13)
}
  0x22   : > { %s685_s18 = smov 128   ;;  %s686_s19 = smov 8  }
  0x23   : > { %480 = dma.hbm_to_vmem [thread:$0]  (!%p784_p0), %s145_s30, 256, %s147_s4, %s134_s6, %s685_s18, %s685_s18, %s686_s19  }
  0x24   : > { %p175_p3 = scmp.lt.s32.totalorder %s682_s14, 3  ;;  %s166_s29 = scalar_lea.hbm %s888_s1, %s457_s27 }
  0x25   : > { %s160_s7 = scalar_lea.vmem [#allocation5], %s440_s26  ;;  %s157_s15 = scalar_lea.sflag [#allocation6], %s771_s25 }
  0x26   : > { %p805_p5 = pnand %p446_p1, %p175_p3  ;;  %s167_s8 = sshll.u32 %s160_s7, 4  ;;  %s168_s8 = int_to_ptr.vmem [resolvable:$true] %s167_s8 }
  0x27   : > { %s583_s16 = scalar_lea.vmem %s168_s8, 256  ;;  %s687_s30 = smov [#allocation5]  }
  0x28   : > { %p584_p6 = scmp.ne.s32.totalorder %s168_s8, %s583_s16  ;;  %s588_s4 = sshll.u32 %s687_s30, 4  ;;  %s589_s4 = int_to_ptr.vmem [resolvable:$false] %s588_s4 }
  0x29   : > { %s590_s27 = scalar_lea.vmem %s589_s4, 512  ;;  %p591_p10 = scmp.lt.s32.totalorder %s168_s8, %s589_s4 }
  0x2a   : > { %p586_p4 = pnand %p584_p6, %p544_p2  ;;  %p592_p1 = scmp.lt.s32.totalorder %s590_s27, %s583_s16 }
  0x2c   : > { %p587_p7 = pneg %p586_p4  ;;  %p593_p13 = por %p592_p1, %p591_p10 }
  0x2e   : > { %p594_p3 = pnand %p593_p13, %p587_p7 }
  0x30   : > { %597 = shalt.err (!%p594_p3)
}
  0x31   : > { %483 = dma.hbm_to_vmem [thread:$0]  (!%p784_p0), %s166_s29, 256, %s168_s8, %s157_s15, %s685_s18, %s685_s18, %s686_s19  }
  0x32   : > { %179 = sbr.rel (%p805_p5) target bundleno = 272 (0x110), region = 28  ;;  %s820_s25 = sand.u32 (!%p805_p5), 1, %s666_s10  }
  0x33   : > { %s447_s26 = sshll.u32 (!%p805_p5), %s820_s25, 4  ;;  %s182_s6 = scalar_lea.sflag (!%p805_p5), [#allocation3], %s820_s25 }
  0x34   : > { %s185_s20 = scalar_lea.vmem (!%p805_p5), [#allocation2], %s447_s26 }
  0x37   : > { %649 = dma.done.wait (%p753_p8), %s182_s6, 256  }
  0x38   : > { %651 = vsyncadd (%p753_p8), %s182_s6, 4294967040  ;;  %s191_s5 = scalar_lea.sflag [#allocation6], %s820_s25  ;;  %s194_s18 = scalar_lea.vmem [#allocation5], %s447_s26 }
  0x39   : > { %653 = dma.done.wait (%p753_p8), %s191_s5, 256  }
  0x3a   : > { %655 = vsyncadd (%p753_p8), %s191_s5, 4294967040  ;;  %vm226_vm0 = vcmask 130048   ;;  %v225_v0 = vld [vmem:[%s194_s18 + $0x8] sm:$0xff]  ;;  %v224_v1 = vld [vmem:[%s194_s18] sm:$0xff]  ;;  %s219_s19 = scalar_lea.vmem [#allocation7], %s447_s26  ;;  %s459_s29 = sshll.u32 %s674_s12, 8 }
  0x3b   : > { %v222_v2 = vld [vmem:[%s185_s20] sm:$0xff]  ;;  %464 = vmatprep.subr.mxu0 %v225_v0  ;;  %v223_v3 = vld [vmem:[%s185_s20 + $0x8] sm:$0xff]  ;;  %s326_s28 = sshll.u32 %s219_s19, 4  ;;  %s839_s7 = scalar_lea.hbm %s889_s2, %s459_s29  ;;  %s834_s28 = int_to_ptr.vmem [resolvable:$true] %s326_s28 }
  0x3c   : > { %468 = vmatprep.mubr.msk.f32.mxu0 %vm226_vm0, %v222_v2  ;;  %465 = vmatpush3.msra.mxu0 %v225_v0  ;;  %s311_s8 = scalar_lea.sflag [#allocation4], %s820_s25  ;;  %s598_s15 = scalar_lea.vmem %s834_s28, 256 }
  0x3d   : > { %466 = vmatprep.subr.mxu0 %v224_v1  ;;  %p599_p8 = scmp.ne.s32.totalorder %s834_s28, %s598_s15  ;;  %s688_s12 = smov [#allocation7]  }
  0x3e   : > { %467 = vmatpush3.msra.mxu0 %v224_v1  ;;  %s602_s16 = sshll.u32 %s688_s12, 4  ;;  %s603_s16 = int_to_ptr.vmem [resolvable:$false] %s602_s16 }
  0x3f   : > { %469 = vmatmul.mubr.msk.f32.vlgmr.msra.gmra.mxu0 %vm226_vm0, %v223_v3  ;;  %p600_p0 = pnand %p599_p8, %p757_p9  ;;  %s604_s30 = scalar_lea.vmem %s603_s16, 512 }
  0x40   : > { %p605_p5 = scmp.lt.s32.totalorder %s834_s28, %s603_s16  ;;  %p606_p6 = scmp.lt.s32.totalorder %s604_s30, %s598_s15 }
  0x41   : > { %p601_p2 = pneg %p600_p0 }
  0x42   : > { %p607_p4 = por %p606_p6, %p605_p5 }
  0x44   : > { %p608_p7 = pnand %p607_p4, %p601_p2 }
  0xff   : > { %v470_v4 = vpop.f32.mrf.mxu0 }
 0x100   : > { %309 = vst [vmem:[%s219_s19 + $0x8] sm:$0xff] %v470_v4 }
 0x101   : > { %v299_v5 = vpop.f32.mrf.mxu0 }
 0x102   : > { %308 = vst [vmem:[%s219_s19] sm:$0xff] %v299_v5 }
 0x103   : > { %611 = shalt.err (!%p608_p7)
}
 0x104   : > { %s612_s4 = scalar_lea.hbm %s839_s7, 256  ;;  %s616_s6 = scalar_lea.hbm %s889_s2, 512 }
 0x105   : > { %p613_p10 = scmp.ne.s32.totalorder %s839_s7, %s612_s4  ;;  %p617_p3 = scmp.lt.s32.totalorder %s839_s7, %s889_s2 }
 0x106   : > { %p618_p8 = scmp.lt.s32.totalorder %s616_s6, %s612_s4 }
 0x107   : > { %p614_p1 = pnand %p613_p10, %p757_p9 }
 0x108   : > { %p619_p0 = por %p618_p8, %p617_p3 }
 0x109   : > { %p615_p13 = pneg %p614_p1 }
 0x10b   : > { %p620_p2 = pnand %p619_p0, %p615_p13 }
 0x10d   : > { %623 = shalt.err (!%p620_p2)
}
 0x10e   : > { %s689_s18 = smov 128   ;;  %s690_s19 = smov 8  }
 0x10f   : > { %475 = dma.vmem_to_hbm [thread:$0]  (%p757_p9), %s834_s28, 256, %s839_s7, %s311_s8, %s689_s18, %s689_s18, %s690_s19  }
 0x110 PF: > { %s341_s29 = sand.u32 1, %s662_s9   ;;  %p485_p5 = pnand %p439_p12, %p764_p11 }
 0x111   : > { %s342_s21 = scalar_lea.sflag [#allocation4], %s341_s29 }
 0x112   : > { %p486_p6 = pneg %p485_p5 }
 0x114   : > { %657 = dma.done.wait (%p486_p6), %s342_s21, 256  }
 0x115   : > { %659 = vsyncadd (%p486_p6), %s342_s21, 4294967040  ;;  %s21_s14 = sadd.s32 1, %s682_s14   ;;  %s896_s9 = smov %s666_s10 }
 0x116   : > { %p18_p4 = scmp.ge.s32.totalorder %s21_s14, 4   ;;  %s897_s10 = smov %s670_s11 }
 0x117   : > { %s898_s11 = smov %s762_s23  ;;  %s899_s12 = smov %s678_s13 }
 0x118   : > { %s900_s13 = smov %s902_s17  ;;  %20 = sbr.rel (!%p18_p4) target bundleno = 8 (0x8), region = 86 }
 0x11d   :  { %347 = vsyncpa [#allocation3], 1 }
 0x11e   :  { %349 = vsyncpa [#allocation3 + $0x1], 1 }
 0x11f   :  { %350 = vsyncpa [#allocation6], 1 }
 0x120   :  { %352 = vsyncpa [#allocation6 + $0x1], 1 }
 0x121   :  { %353 = vsyncpa [#allocation4], 1 }
 0x122   :  { %355 = vsyncpa [#allocation4 + $0x1], 1 }

</bundles_post_ra>
